<compile_context>
chip_gen: v7x
topology: tpu7x:2x2x1
jax: 0.10.0
libtpu: 0.0.40
codegen_flags: <defaults>
</compile_context>

<pallas_src>
import functools

import jax
import jax.numpy as jnp
from jax.experimental import pallas as pl
from jax.experimental.pallas import tpu as pltpu


_RT = (((1,), (1,)), ((), ()))   # contract trailing dims:  A @ B^T
_TT = (((0,), (0,)), ((), ()))   # contract leading dims:   A^T @ B  (no explicit transpose)


def _gat_fused_kernel(x_ref, adj_ref, w_all_ref, a1_ref, a2_ref,
                      w_out_ref, a1o_ref, a2o_ref, out_ref, *, alpha, nheads, nhid):
    """Whole GAT forward for one block of batch elements.

    x_ref   : [Bblk*N, Fin]     flattened node features
    adj_ref : [Bblk, N, N]      adjacency per batch element
    w_all   : [Fin, H*F]        stacked head weights
    a1, a2  : [H, H*F]          block-diagonal attention vectors (a[:F], a[F:]) per head
    w_out   : [H*F, Cpad]       output-layer weight, zero-padded to Cpad lanes
    a1o,a2o : [1, Cpad]         output-layer attention vectors, zero-padded
    out_ref : [Bblk*N, Cpad]
    """
    bblk, n, _ = adj_ref.shape
    cpad = out_ref.shape[-1]
    neg = jnp.float32(-9.0e15)
    f32 = jnp.float32

    x = x_ref[...]
    w_all = w_all_ref[...]
    w_out = w_out_ref[...]

    # Shared feature transform for every head and every batch row at once (MXU).
    h_all = jnp.dot(x, w_all, preferred_element_type=f32)                               # [R, H*F]

    # Attention-vector projections on the MXU (not XLU row reductions).
    #   e1[r, h] = h_all[r, hF:(h+1)F] . a1_h   (column form)
    #   e2[h, r] = h_all[r, hF:(h+1)F] . a2_h   (row form -> broadcast later, no transpose)
    e1_all = jax.lax.dot_general(h_all, a1_ref[...], _RT, preferred_element_type=f32)   # [R, H]
    e2_rows = jax.lax.dot_general(a2_ref[...], h_all, _RT, preferred_element_type=f32)  # [H, R]

    def masked_softmax(e, mask):
        e = jnp.where(e > 0, e, alpha * e)                     # LeakyReLU(alpha)
        s = jnp.where(mask, e, neg)
        s = s - jnp.max(s, axis=1, keepdims=True)
        p = jnp.exp(s)
        inv = pl.reciprocal(jnp.sum(p, axis=1, keepdims=True), approx=True)   # EUP slot
        return p * inv

    def elu(v):
        return jnp.where(v > 0, v, jnp.exp(v) - 1.0)

    for b in range(bblk):                                      # static unroll over batch block
        r0 = b * n
        mask = adj_ref[b] > 0                                  # [N, N]

        # Multi-head layer (concat=True => per-head ELU).  The concat + out-layer matmul
        # are fused:  concat_h(o_h) @ W_out == sum_h  o_h @ W_out[h*F:(h+1)*F, :]
        ho = jnp.zeros((n, cpad), f32)
        for hd in range(nheads):
            e = (e1_all[r0:r0 + n, hd:hd + 1] +
                 e2_rows[hd:hd + 1, r0:r0 + n])                # [N, N] via broadcast
            att = masked_softmax(e, mask)
            h_h = h_all[r0:r0 + n, hd * nhid:(hd + 1) * nhid]  # [N, F]
            # torch: (h.permute(0,2,1) @ att).permute(0,2,1) == att^T @ h
            hp = elu(jax.lax.dot_general(att, h_h, _TT, preferred_element_type=f32))
            ho = ho + jnp.dot(hp, w_out[hd * nhid:(hd + 1) * nhid, :],
                              preferred_element_type=f32)      # [N, Cpad]

        # Output attention layer (concat=False) followed by the final F.elu.
        e1o = jax.lax.dot_general(ho, a1o_ref[...], _RT, preferred_element_type=f32)    # [N, 1]
        e2o = jax.lax.dot_general(a2o_ref[...], ho, _RT, preferred_element_type=f32)    # [1, N]
        att_o = masked_softmax(e1o + e2o, mask)
        out_b = jax.lax.dot_general(att_o, ho, _TT, preferred_element_type=f32)         # [N, Cpad]
        out_ref[r0:r0 + n, :] = elu(out_b)                     # lane-dense (Cpad % 128 == 0) store


def _round_up(v, m):
    return ((v + m - 1) // m) * m


def _pick_batch_block(batch, n_nodes, rows_target=256):
    """Largest divisor of `batch` keeping block rows <= rows_target (MXU-friendly rows)."""
    bblk = 1
    for cand in range(1, batch + 1):
        if batch % cand == 0 and cand * n_nodes <= rows_target:
            bblk = cand
    return bblk


def _pack_params(params, *, nhid, nclass, nheads, cpad):
    """Stack per-head weights; build block-diagonal a-projections; zero-pad the out layer."""
    hf = nheads * nhid
    w_all = jnp.concatenate([w for (w, _) in params["heads"]], axis=1)         # [Fin, H*F]
    a1 = jnp.zeros((nheads, hf), jnp.float32)
    a2 = jnp.zeros((nheads, hf), jnp.float32)
    for h, (_, a) in enumerate(params["heads"]):
        a1 = a1.at[h, h * nhid:(h + 1) * nhid].set(a[0])
        a2 = a2.at[h, h * nhid:(h + 1) * nhid].set(a[1])
    w_out, a_out = params["out"]                                               # [H*F, C], [2, C]
    w_out_p = jnp.zeros((hf, cpad), jnp.float32).at[:, :nclass].set(w_out)
    a1o = jnp.zeros((1, cpad), jnp.float32).at[0, :nclass].set(a_out[0])
    a2o = jnp.zeros((1, cpad), jnp.float32).at[0, :nclass].set(a_out[1])
    return w_all, a1, a2, w_out_p, a1o, a2o


def gat_forward(x, adj, params, *, alpha, nfeat, nhid, nclass, nheads):
    """Full GAT forward (multi-head layer -> output attention layer -> ELU), one pallas_call."""
    B, N, Fin = x.shape
    assert Fin == nfeat and adj.shape == (B, N, N)
    hf = nheads * nhid
    cpad = _round_up(nclass, 128)          # lane-dense output; padding sliced off below
    bblk = _pick_batch_block(B, N)
    rows = bblk * N

    w_all, a1, a2, w_out_p, a1o, a2o = _pack_params(
        params, nhid=nhid, nclass=nclass, nheads=nheads, cpad=cpad)

    x2 = x.reshape(B * N, Fin).astype(jnp.float32)     # free XLA reshape; keeps kernel blocks 2-D

    kernel = functools.partial(_gat_fused_kernel, alpha=alpha, nheads=nheads, nhid=nhid)
    out2 = pl.pallas_call(
        kernel,
        out_shape=jax.ShapeDtypeStruct((B * N, cpad), jnp.float32),
        grid=(B // bblk,),
        in_specs=[
            pl.BlockSpec((rows, Fin), lambda i: (i, 0)),
            pl.BlockSpec((bblk, N, N), lambda i: (i, 0, 0)),
            pl.BlockSpec((Fin, hf), lambda i: (0, 0)),
            pl.BlockSpec((nheads, hf), lambda i: (0, 0)),
            pl.BlockSpec((nheads, hf), lambda i: (0, 0)),
            pl.BlockSpec((hf, cpad), lambda i: (0, 0)),
            pl.BlockSpec((1, cpad), lambda i: (0, 0)),
            pl.BlockSpec((1, cpad), lambda i: (0, 0)),
        ],
        out_specs=pl.BlockSpec((rows, cpad), lambda i: (i, 0)),
        compiler_params=pltpu.CompilerParams(dimension_semantics=("parallel",)),
    )(x2, adj, w_all, a1, a2, w_out_p, a1o, a2o)

    return out2.reshape(B, N, cpad)[:, :, :nclass]


# ------------------------- init + pure-JAX reference ------------------------------------


def _xavier_uniform(key, shape, gain):
    fan_in, fan_out = shape
    bound = gain * (6.0 / (fan_in + fan_out)) ** 0.5
    return jax.random.uniform(key, shape, jnp.float32, -bound, bound)


def init_gat_params(key, nfeat, nhid, nclass, nheads, gain=1.414):
    params = {"heads": [], "out": None}
    keys = jax.random.split(key, 2 * nheads + 2)
    for i in range(nheads):
        w = _xavier_uniform(keys[2 * i], (nfeat, nhid), gain)
        a = _xavier_uniform(keys[2 * i + 1], (2 * nhid, 1), gain)    # torch shape (2*F, 1)
        params["heads"].append((w, a.reshape(2, nhid)))
    w_out = _xavier_uniform(keys[-2], (nhid * nheads, nclass), gain)
    a_out = _xavier_uniform(keys[-1], (2 * nclass, 1), gain)
    params["out"] = (w_out, a_out.reshape(2, nclass))
    return params


def _layer_ref(x, adj, w, a, alpha, concat):
    """Pure-JAX mirror of the PyTorch GraphAttentionLayer (eval mode)."""
    h = jnp.einsum("bnf,fo->bno", x, w)
    e = (jnp.einsum("bno,o->bn", h, a[0])[:, :, None]
         + jnp.einsum("bno,o->bn", h, a[1])[:, None, :])
    e = jnp.where(e > 0, e, alpha * e)
    att = jax.nn.softmax(jnp.where(adj > 0, e, -9.0e15), axis=2)
    hp = jnp.einsum("bij,bif->bjf", att, h)        # == att^T @ h (torch's permute trick)
    return jnp.where(hp > 0, hp, jnp.exp(hp) - 1.0) if concat else hp


def gat_reference(x, adj, params, *, alpha):
    xh = jnp.concatenate(
        [_layer_ref(x, adj, w, a, alpha, True) for (w, a) in params["heads"]], axis=2)
    w_out, a_out = params["out"]
    hp = _layer_ref(xh, adj, w_out, a_out, alpha, False)
    return jnp.where(hp > 0, hp, jnp.exp(hp) - 1.0)


if __name__ == "__main__":
    B, N = 2, 16
    nfeat, nhid, nclass, nheads = 8, 8, 4, 2
    alpha = 0.2               # LeakyReLU negative slope
    # dropout = 0.6 in the reference module -> identity in eval mode (see TODO above)

    key = jax.random.PRNGKey(0)
    k_x, k_adj, k_p = jax.random.split(key, 3)

    x = jax.random.normal(k_x, (B, N, nfeat), jnp.float32)
    adj = (jax.random.uniform(k_adj, (B, N, N)) > 0.5).astype(jnp.float32)
    adj = jnp.maximum(adj, jnp.eye(N, dtype=jnp.float32)[None, :, :])   # self-loops

    params = init_gat_params(k_p, nfeat, nhid, nclass, nheads)

    out = gat_forward(x, adj, params, alpha=alpha,
                      nfeat=nfeat, nhid=nhid, nclass=nclass, nheads=nheads)
    jax.block_until_ready(out)
    assert out.shape == (B, N, nclass), out.shape

    ref = gat_reference(x, adj, params, alpha=alpha)
    err = float(jnp.max(jnp.abs(out - ref)))
    assert err < 5e-2, f"max abs err vs pure-JAX reference: {err}"
    print("KERNEL_OK")
</pallas_src>

<mosaic_0001>
module attributes {stable_mosaic.version = 11 : i64} {
  func.func @_gat_fused_kernel(%arg0: i32, %arg1: memref<32x8xf32, #tpu.memory_space<vmem>>, %arg2: memref<2x16x16xf32, #tpu.memory_space<vmem>>, %arg3: memref<8x16xf32, #tpu.memory_space<vmem>>, %arg4: memref<2x16xf32, #tpu.memory_space<vmem>>, %arg5: memref<2x16xf32, #tpu.memory_space<vmem>>, %arg6: memref<16x128xf32, #tpu.memory_space<vmem>>, %arg7: memref<1x128xf32, #tpu.memory_space<vmem>>, %arg8: memref<1x128xf32, #tpu.memory_space<vmem>>, %arg9: memref<32x128xf32, #tpu.memory_space<vmem>>) attributes {dimension_semantics = [#tpu.dimension_semantics<parallel>], iteration_bounds = array<i64: 1>, scalar_prefetch = 0 : i64, scratch_operands = 0 : i64, tpu.core_type = #tpu.core_type<tc>, window_params = [{transform_indices = @transform_0, window_bounds = array<i64: 32, 8>}, {transform_indices = @transform_1, window_bounds = array<i64: 2, 16, 16>}, {pipeline_mode = #tpu.pipeline_mode<synchronous>, transform_indices = @transform_2, window_bounds = array<i64: 8, 16>}, {pipeline_mode = #tpu.pipeline_mode<synchronous>, transform_indices = @transform_3, window_bounds = array<i64: 2, 16>}, {pipeline_mode = #tpu.pipeline_mode<synchronous>, transform_indices = @transform_4, window_bounds = array<i64: 2, 16>}, {pipeline_mode = #tpu.pipeline_mode<synchronous>, transform_indices = @transform_5, window_bounds = array<i64: 16, 128>}, {pipeline_mode = #tpu.pipeline_mode<synchronous>, transform_indices = @transform_6, window_bounds = array<i64: 1, 128>}, {pipeline_mode = #tpu.pipeline_mode<synchronous>, transform_indices = @transform_7, window_bounds = array<i64: 1, 128>}, {transform_indices = @transform_8, window_bounds = array<i64: 32, 128>}]} {
    %c0 = arith.constant 0 : index
    %c0_0 = arith.constant 0 : index
    %0 = vector.load %arg1[%c0, %c0_0] : memref<32x8xf32, #tpu.memory_space<vmem>>, vector<32x8xf32>
    %c0_1 = arith.constant 0 : index
    %c0_2 = arith.constant 0 : index
    %1 = vector.load %arg3[%c0_1, %c0_2] : memref<8x16xf32, #tpu.memory_space<vmem>>, vector<8x16xf32>
    %c0_3 = arith.constant 0 : index
    %c0_4 = arith.constant 0 : index
    %2 = vector.load %arg6[%c0_3, %c0_4] : memref<16x128xf32, #tpu.memory_space<vmem>>, vector<16x128xf32>
    %cst = arith.constant dense<0.000000e+00> : vector<32x16xf32>
    %3 = tpu.matmul %0, %1, %cst {dimension_numbers = #tpu.dot_dimension_numbers<[1], [0], [0], [1], [0, 0, 1, 1], [], []>} : vector<32x8xf32>, vector<8x16xf32>, vector<32x16xf32> -> vector<32x16xf32>
    %c0_5 = arith.constant 0 : index
    %c0_6 = arith.constant 0 : index
    %4 = vector.load %arg4[%c0_5, %c0_6] : memref<2x16xf32, #tpu.memory_space<vmem>>, vector<2x16xf32>
    %cst_7 = arith.constant dense<0.000000e+00> : vector<32x2xf32>
    %5 = tpu.matmul %3, %4, %cst_7 {dimension_numbers = #tpu.dot_dimension_numbers<[1], [1], [0], [0], [0, 0, 1, 0], [], []>} : vector<32x16xf32>, vector<2x16xf32>, vector<32x2xf32> -> vector<32x2xf32>
    %c0_8 = arith.constant 0 : index
    %c0_9 = arith.constant 0 : index
    %6 = vector.load %arg5[%c0_8, %c0_9] : memref<2x16xf32, #tpu.memory_space<vmem>>, vector<2x16xf32>
    %cst_10 = arith.constant dense<0.000000e+00> : vector<2x32xf32>
    %7 = tpu.matmul %6, %3, %cst_10 {dimension_numbers = #tpu.dot_dimension_numbers<[1], [1], [0], [0], [0, 0, 1, 0], [], []>} : vector<2x16xf32>, vector<32x16xf32>, vector<2x32xf32> -> vector<2x32xf32>
    %c0_11 = arith.constant 0 : index
    %c0_12 = arith.constant 0 : index
    %c0_13 = arith.constant 0 : index
    %8 = vector.load %arg2[%c0_11, %c0_12, %c0_13] : memref<2x16x16xf32, #tpu.memory_space<vmem>>, vector<1x16x16xf32>
    %9 = vector.shape_cast %8 : vector<1x16x16xf32> to vector<16x16xf32>
    %cst_14 = arith.constant 0.000000e+00 : f32
    %10 = vector.broadcast %cst_14 : f32 to vector<16x16xf32>
    %11 = arith.cmpf ogt, %9, %10 : vector<16x16xf32>
    %cst_15 = arith.constant 0.000000e+00 : f32
    %12 = vector.broadcast %cst_15 : f32 to vector<16x128xf32>
    %13 = vector.extract_strided_slice %5 {offsets = [0, 0], sizes = [16, 1], strides = [1, 1]} : vector<32x2xf32> to vector<16x1xf32>
    %14 = vector.extract_strided_slice %7 {offsets = [0, 0], sizes = [1, 16], strides = [1, 1]} : vector<2x32xf32> to vector<1x16xf32>
    %15 = vector.broadcast %13 : vector<16x1xf32> to vector<16x16xf32>
    %16 = vector.broadcast %14 : vector<1x16xf32> to vector<16x16xf32>
    %17 = arith.addf %15, %16 : vector<16x16xf32>
    %cst_16 = arith.constant 0.000000e+00 : f32
    %18 = vector.broadcast %cst_16 : f32 to vector<16x16xf32>
    %19 = arith.cmpf ogt, %17, %18 : vector<16x16xf32>
    %cst_17 = arith.constant 2.000000e-01 : f32
    %20 = vector.broadcast %cst_17 : f32 to vector<16x16xf32>
    %21 = arith.mulf %20, %17 : vector<16x16xf32>
    %22 = arith.select %19, %17, %21 : vector<16x16xi1>, vector<16x16xf32>
    %cst_18 = arith.constant -9.000000e+15 : f32
    %23 = vector.broadcast %cst_18 : f32 to vector<16x16xf32>
    %24 = arith.select %11, %22, %23 : vector<16x16xi1>, vector<16x16xf32>
    %cst_19 = arith.constant dense<0xFF800000> : vector<16xf32>
    %25 = vector.multi_reduction <maximumf>, %24, %cst_19 [1] : vector<16x16xf32> to vector<16xf32>
    %26 = vector.shape_cast %25 : vector<16xf32> to vector<16x1xf32>
    %27 = vector.broadcast %26 : vector<16x1xf32> to vector<16x16xf32>
    %28 = arith.subf %24, %27 : vector<16x16xf32>
    %29 = math.exp %28 : vector<16x16xf32>
    %cst_20 = arith.constant dense<0.000000e+00> : vector<16xf32>
    %30 = vector.multi_reduction <add>, %29, %cst_20 [1] : vector<16x16xf32> to vector<16xf32>
    %31 = vector.shape_cast %30 : vector<16xf32> to vector<16x1xf32>
    %32 = tpu.reciprocal %31 {approx = true} : vector<16x1xf32> -> vector<16x1xf32>
    %33 = vector.broadcast %32 : vector<16x1xf32> to vector<16x16xf32>
    %34 = arith.mulf %29, %33 : vector<16x16xf32>
    %35 = vector.extract_strided_slice %3 {offsets = [0, 0], sizes = [16, 8], strides = [1, 1]} : vector<32x16xf32> to vector<16x8xf32>
    %cst_21 = arith.constant dense<0.000000e+00> : vector<16x8xf32>
    %36 = tpu.matmul %34, %35, %cst_21 {dimension_numbers = #tpu.dot_dimension_numbers<[0], [0], [1], [1], [0, 1, 1, 1], [], []>} : vector<16x16xf32>, vector<16x8xf32>, vector<16x8xf32> -> vector<16x8xf32>
    %cst_22 = arith.constant 0.000000e+00 : f32
    %37 = vector.broadcast %cst_22 : f32 to vector<16x8xf32>
    %38 = arith.cmpf ogt, %36, %37 : vector<16x8xf32>
    %39 = math.exp %36 : vector<16x8xf32>
    %cst_23 = arith.constant 1.000000e+00 : f32
    %40 = vector.broadcast %cst_23 : f32 to vector<16x8xf32>
    %41 = arith.subf %39, %40 : vector<16x8xf32>
    %42 = arith.select %38, %36, %41 : vector<16x8xi1>, vector<16x8xf32>
    %43 = vector.extract_strided_slice %2 {offsets = [0, 0], sizes = [8, 128], strides = [1, 1]} : vector<16x128xf32> to vector<8x128xf32>
    %cst_24 = arith.constant dense<0.000000e+00> : vector<16x128xf32>
    %44 = tpu.matmul %42, %43, %cst_24 {dimension_numbers = #tpu.dot_dimension_numbers<[1], [0], [0], [1], [0, 0, 1, 1], [], []>} : vector<16x8xf32>, vector<8x128xf32>, vector<16x128xf32> -> vector<16x128xf32>
    %45 = arith.addf %12, %44 : vector<16x128xf32>
    %46 = vector.extract_strided_slice %5 {offsets = [0, 1], sizes = [16, 1], strides = [1, 1]} : vector<32x2xf32> to vector<16x1xf32>
    %47 = vector.extract_strided_slice %7 {offsets = [1, 0], sizes = [1, 16], strides = [1, 1]} : vector<2x32xf32> to vector<1x16xf32>
    %48 = vector.broadcast %46 : vector<16x1xf32> to vector<16x16xf32>
    %49 = vector.broadcast %47 : vector<1x16xf32> to vector<16x16xf32>
    %50 = arith.addf %48, %49 : vector<16x16xf32>
    %cst_25 = arith.constant 0.000000e+00 : f32
    %51 = vector.broadcast %cst_25 : f32 to vector<16x16xf32>
    %52 = arith.cmpf ogt, %50, %51 : vector<16x16xf32>
    %cst_26 = arith.constant 2.000000e-01 : f32
    %53 = vector.broadcast %cst_26 : f32 to vector<16x16xf32>
    %54 = arith.mulf %53, %50 : vector<16x16xf32>
    %55 = arith.select %52, %50, %54 : vector<16x16xi1>, vector<16x16xf32>
    %cst_27 = arith.constant -9.000000e+15 : f32
    %56 = vector.broadcast %cst_27 : f32 to vector<16x16xf32>
    %57 = arith.select %11, %55, %56 : vector<16x16xi1>, vector<16x16xf32>
    %cst_28 = arith.constant dense<0xFF800000> : vector<16xf32>
    %58 = vector.multi_reduction <maximumf>, %57, %cst_28 [1] : vector<16x16xf32> to vector<16xf32>
    %59 = vector.shape_cast %58 : vector<16xf32> to vector<16x1xf32>
    %60 = vector.broadcast %59 : vector<16x1xf32> to vector<16x16xf32>
    %61 = arith.subf %57, %60 : vector<16x16xf32>
    %62 = math.exp %61 : vector<16x16xf32>
    %cst_29 = arith.constant dense<0.000000e+00> : vector<16xf32>
    %63 = vector.multi_reduction <add>, %62, %cst_29 [1] : vector<16x16xf32> to vector<16xf32>
    %64 = vector.shape_cast %63 : vector<16xf32> to vector<16x1xf32>
    %65 = tpu.reciprocal %64 {approx = true} : vector<16x1xf32> -> vector<16x1xf32>
    %66 = vector.broadcast %65 : vector<16x1xf32> to vector<16x16xf32>
    %67 = arith.mulf %62, %66 : vector<16x16xf32>
    %68 = vector.extract_strided_slice %3 {offsets = [0, 8], sizes = [16, 8], strides = [1, 1]} : vector<32x16xf32> to vector<16x8xf32>
    %cst_30 = arith.constant dense<0.000000e+00> : vector<16x8xf32>
    %69 = tpu.matmul %67, %68, %cst_30 {dimension_numbers = #tpu.dot_dimension_numbers<[0], [0], [1], [1], [0, 1, 1, 1], [], []>} : vector<16x16xf32>, vector<16x8xf32>, vector<16x8xf32> -> vector<16x8xf32>
    %cst_31 = arith.constant 0.000000e+00 : f32
    %70 = vector.broadcast %cst_31 : f32 to vector<16x8xf32>
    %71 = arith.cmpf ogt, %69, %70 : vector<16x8xf32>
    %72 = math.exp %69 : vector<16x8xf32>
    %cst_32 = arith.constant 1.000000e+00 : f32
    %73 = vector.broadcast %cst_32 : f32 to vector<16x8xf32>
    %74 = arith.subf %72, %73 : vector<16x8xf32>
    %75 = arith.select %71, %69, %74 : vector<16x8xi1>, vector<16x8xf32>
    %76 = vector.extract_strided_slice %2 {offsets = [8, 0], sizes = [8, 128], strides = [1, 1]} : vector<16x128xf32> to vector<8x128xf32>
    %cst_33 = arith.constant dense<0.000000e+00> : vector<16x128xf32>
    %77 = tpu.matmul %75, %76, %cst_33 {dimension_numbers = #tpu.dot_dimension_numbers<[1], [0], [0], [1], [0, 0, 1, 1], [], []>} : vector<16x8xf32>, vector<8x128xf32>, vector<16x128xf32> -> vector<16x128xf32>
    %78 = arith.addf %45, %77 : vector<16x128xf32>
    %c0_34 = arith.constant 0 : index
    %c0_35 = arith.constant 0 : index
    %79 = vector.load %arg7[%c0_34, %c0_35] : memref<1x128xf32, #tpu.memory_space<vmem>>, vector<1x128xf32>
    %cst_36 = arith.constant dense<0.000000e+00> : vector<16x1xf32>
    %80 = tpu.matmul %78, %79, %cst_36 {dimension_numbers = #tpu.dot_dimension_numbers<[1], [1], [0], [0], [0, 0, 1, 0], [], []>} : vector<16x128xf32>, vector<1x128xf32>, vector<16x1xf32> -> vector<16x1xf32>
    %c0_37 = arith.constant 0 : index
    %c0_38 = arith.constant 0 : index
    %81 = vector.load %arg8[%c0_37, %c0_38] : memref<1x128xf32, #tpu.memory_space<vmem>>, vector<1x128xf32>
    %cst_39 = arith.constant dense<0.000000e+00> : vector<1x16xf32>
    %82 = tpu.matmul %81, %78, %cst_39 {dimension_numbers = #tpu.dot_dimension_numbers<[1], [1], [0], [0], [0, 0, 1, 0], [], []>} : vector<1x128xf32>, vector<16x128xf32>, vector<1x16xf32> -> vector<1x16xf32>
    %83 = vector.broadcast %80 : vector<16x1xf32> to vector<16x16xf32>
    %84 = vector.broadcast %82 : vector<1x16xf32> to vector<16x16xf32>
    %85 = arith.addf %83, %84 : vector<16x16xf32>
    %cst_40 = arith.constant 0.000000e+00 : f32
    %86 = vector.broadcast %cst_40 : f32 to vector<16x16xf32>
    %87 = arith.cmpf ogt, %85, %86 : vector<16x16xf32>
    %cst_41 = arith.constant 2.000000e-01 : f32
    %88 = vector.broadcast %cst_41 : f32 to vector<16x16xf32>
    %89 = arith.mulf %88, %85 : vector<16x16xf32>
    %90 = arith.select %87, %85, %89 : vector<16x16xi1>, vector<16x16xf32>
    %cst_42 = arith.constant -9.000000e+15 : f32
    %91 = vector.broadcast %cst_42 : f32 to vector<16x16xf32>
    %92 = arith.select %11, %90, %91 : vector<16x16xi1>, vector<16x16xf32>
    %cst_43 = arith.constant dense<0xFF800000> : vector<16xf32>
    %93 = vector.multi_reduction <maximumf>, %92, %cst_43 [1] : vector<16x16xf32> to vector<16xf32>
    %94 = vector.shape_cast %93 : vector<16xf32> to vector<16x1xf32>
    %95 = vector.broadcast %94 : vector<16x1xf32> to vector<16x16xf32>
    %96 = arith.subf %92, %95 : vector<16x16xf32>
    %97 = math.exp %96 : vector<16x16xf32>
    %cst_44 = arith.constant dense<0.000000e+00> : vector<16xf32>
    %98 = vector.multi_reduction <add>, %97, %cst_44 [1] : vector<16x16xf32> to vector<16xf32>
    %99 = vector.shape_cast %98 : vector<16xf32> to vector<16x1xf32>
    %100 = tpu.reciprocal %99 {approx = true} : vector<16x1xf32> -> vector<16x1xf32>
    %101 = vector.broadcast %100 : vector<16x1xf32> to vector<16x16xf32>
    %102 = arith.mulf %97, %101 : vector<16x16xf32>
    %cst_45 = arith.constant dense<0.000000e+00> : vector<16x128xf32>
    %103 = tpu.matmul %102, %78, %cst_45 {dimension_numbers = #tpu.dot_dimension_numbers<[0], [0], [1], [1], [0, 1, 1, 1], [], []>} : vector<16x16xf32>, vector<16x128xf32>, vector<16x128xf32> -> vector<16x128xf32>
    %cst_46 = arith.constant 0.000000e+00 : f32
    %104 = vector.broadcast %cst_46 : f32 to vector<16x128xf32>
    %105 = arith.cmpf ogt, %103, %104 : vector<16x128xf32>
    %106 = math.exp %103 : vector<16x128xf32>
    %cst_47 = arith.constant 1.000000e+00 : f32
    %107 = vector.broadcast %cst_47 : f32 to vector<16x128xf32>
    %108 = arith.subf %106, %107 : vector<16x128xf32>
    %109 = arith.select %105, %103, %108 : vector<16x128xi1>, vector<16x128xf32>
    %c0_48 = arith.constant 0 : index
    %c0_49 = arith.constant 0 : index
    %110 = vector.load %arg9[%c0_48, %c0_49] : memref<32x128xf32, #tpu.memory_space<vmem>>, vector<16x128xf32>
    tpu.vector_store %arg9[%c0_48, %c0_49], %109 {strides = array<i32>} : memref<32x128xf32, #tpu.memory_space<vmem>>, vector<16x128xf32>,
    %c1 = arith.constant 1 : index
    %c0_50 = arith.constant 0 : index
    %c0_51 = arith.constant 0 : index
    %111 = vector.load %arg2[%c1, %c0_50, %c0_51] : memref<2x16x16xf32, #tpu.memory_space<vmem>>, vector<1x16x16xf32>
    %112 = vector.shape_cast %111 : vector<1x16x16xf32> to vector<16x16xf32>
    %cst_52 = arith.constant 0.000000e+00 : f32
    %113 = vector.broadcast %cst_52 : f32 to vector<16x16xf32>
    %114 = arith.cmpf ogt, %112, %113 : vector<16x16xf32>
    %cst_53 = arith.constant 0.000000e+00 : f32
    %115 = vector.broadcast %cst_53 : f32 to vector<16x128xf32>
    %116 = vector.extract_strided_slice %5 {offsets = [16, 0], sizes = [16, 1], strides = [1, 1]} : vector<32x2xf32> to vector<16x1xf32>
    %117 = vector.extract_strided_slice %7 {offsets = [0, 16], sizes = [1, 16], strides = [1, 1]} : vector<2x32xf32> to vector<1x16xf32>
    %118 = vector.broadcast %116 : vector<16x1xf32> to vector<16x16xf32>
    %119 = vector.broadcast %117 : vector<1x16xf32> to vector<16x16xf32>
    %120 = arith.addf %118, %119 : vector<16x16xf32>
    %cst_54 = arith.constant 0.000000e+00 : f32
    %121 = vector.broadcast %cst_54 : f32 to vector<16x16xf32>
    %122 = arith.cmpf ogt, %120, %121 : vector<16x16xf32>
    %cst_55 = arith.constant 2.000000e-01 : f32
    %123 = vector.broadcast %cst_55 : f32 to vector<16x16xf32>
    %124 = arith.mulf %123, %120 : vector<16x16xf32>
    %125 = arith.select %122, %120, %124 : vector<16x16xi1>, vector<16x16xf32>
    %cst_56 = arith.constant -9.000000e+15 : f32
    %126 = vector.broadcast %cst_56 : f32 to vector<16x16xf32>
    %127 = arith.select %114, %125, %126 : vector<16x16xi1>, vector<16x16xf32>
    %cst_57 = arith.constant dense<0xFF800000> : vector<16xf32>
    %128 = vector.multi_reduction <maximumf>, %127, %cst_57 [1] : vector<16x16xf32> to vector<16xf32>
    %129 = vector.shape_cast %128 : vector<16xf32> to vector<16x1xf32>
    %130 = vector.broadcast %129 : vector<16x1xf32> to vector<16x16xf32>
    %131 = arith.subf %127, %130 : vector<16x16xf32>
    %132 = math.exp %131 : vector<16x16xf32>
    %cst_58 = arith.constant dense<0.000000e+00> : vector<16xf32>
    %133 = vector.multi_reduction <add>, %132, %cst_58 [1] : vector<16x16xf32> to vector<16xf32>
    %134 = vector.shape_cast %133 : vector<16xf32> to vector<16x1xf32>
    %135 = tpu.reciprocal %134 {approx = true} : vector<16x1xf32> -> vector<16x1xf32>
    %136 = vector.broadcast %135 : vector<16x1xf32> to vector<16x16xf32>
    %137 = arith.mulf %132, %136 : vector<16x16xf32>
    %138 = vector.extract_strided_slice %3 {offsets = [16, 0], sizes = [16, 8], strides = [1, 1]} : vector<32x16xf32> to vector<16x8xf32>
    %cst_59 = arith.constant dense<0.000000e+00> : vector<16x8xf32>
    %139 = tpu.matmul %137, %138, %cst_59 {dimension_numbers = #tpu.dot_dimension_numbers<[0], [0], [1], [1], [0, 1, 1, 1], [], []>} : vector<16x16xf32>, vector<16x8xf32>, vector<16x8xf32> -> vector<16x8xf32>
    %cst_60 = arith.constant 0.000000e+00 : f32
    %140 = vector.broadcast %cst_60 : f32 to vector<16x8xf32>
    %141 = arith.cmpf ogt, %139, %140 : vector<16x8xf32>
    %142 = math.exp %139 : vector<16x8xf32>
    %cst_61 = arith.constant 1.000000e+00 : f32
    %143 = vector.broadcast %cst_61 : f32 to vector<16x8xf32>
    %144 = arith.subf %142, %143 : vector<16x8xf32>
    %145 = arith.select %141, %139, %144 : vector<16x8xi1>, vector<16x8xf32>
    %146 = vector.extract_strided_slice %2 {offsets = [0, 0], sizes = [8, 128], strides = [1, 1]} : vector<16x128xf32> to vector<8x128xf32>
    %cst_62 = arith.constant dense<0.000000e+00> : vector<16x128xf32>
    %147 = tpu.matmul %145, %146, %cst_62 {dimension_numbers = #tpu.dot_dimension_numbers<[1], [0], [0], [1], [0, 0, 1, 1], [], []>} : vector<16x8xf32>, vector<8x128xf32>, vector<16x128xf32> -> vector<16x128xf32>
    %148 = arith.addf %115, %147 : vector<16x128xf32>
    %149 = vector.extract_strided_slice %5 {offsets = [16, 1], sizes = [16, 1], strides = [1, 1]} : vector<32x2xf32> to vector<16x1xf32>
    %150 = vector.extract_strided_slice %7 {offsets = [1, 16], sizes = [1, 16], strides = [1, 1]} : vector<2x32xf32> to vector<1x16xf32>
    %151 = vector.broadcast %149 : vector<16x1xf32> to vector<16x16xf32>
    %152 = vector.broadcast %150 : vector<1x16xf32> to vector<16x16xf32>
    %153 = arith.addf %151, %152 : vector<16x16xf32>
    %cst_63 = arith.constant 0.000000e+00 : f32
    %154 = vector.broadcast %cst_63 : f32 to vector<16x16xf32>
    %155 = arith.cmpf ogt, %153, %154 : vector<16x16xf32>
    %cst_64 = arith.constant 2.000000e-01 : f32
    %156 = vector.broadcast %cst_64 : f32 to vector<16x16xf32>
    %157 = arith.mulf %156, %153 : vector<16x16xf32>
    %158 = arith.select %155, %153, %157 : vector<16x16xi1>, vector<16x16xf32>
    %cst_65 = arith.constant -9.000000e+15 : f32
    %159 = vector.broadcast %cst_65 : f32 to vector<16x16xf32>
    %160 = arith.select %114, %158, %159 : vector<16x16xi1>, vector<16x16xf32>
    %cst_66 = arith.constant dense<0xFF800000> : vector<16xf32>
    %161 = vector.multi_reduction <maximumf>, %160, %cst_66 [1] : vector<16x16xf32> to vector<16xf32>
    %162 = vector.shape_cast %161 : vector<16xf32> to vector<16x1xf32>
    %163 = vector.broadcast %162 : vector<16x1xf32> to vector<16x16xf32>
    %164 = arith.subf %160, %163 : vector<16x16xf32>
    %165 = math.exp %164 : vector<16x16xf32>
    %cst_67 = arith.constant dense<0.000000e+00> : vector<16xf32>
    %166 = vector.multi_reduction <add>, %165, %cst_67 [1] : vector<16x16xf32> to vector<16xf32>
    %167 = vector.shape_cast %166 : vector<16xf32> to vector<16x1xf32>
    %168 = tpu.reciprocal %167 {approx = true} : vector<16x1xf32> -> vector<16x1xf32>
    %169 = vector.broadcast %168 : vector<16x1xf32> to vector<16x16xf32>
    %170 = arith.mulf %165, %169 : vector<16x16xf32>
    %171 = vector.extract_strided_slice %3 {offsets = [16, 8], sizes = [16, 8], strides = [1, 1]} : vector<32x16xf32> to vector<16x8xf32>
    %cst_68 = arith.constant dense<0.000000e+00> : vector<16x8xf32>
    %172 = tpu.matmul %170, %171, %cst_68 {dimension_numbers = #tpu.dot_dimension_numbers<[0], [0], [1], [1], [0, 1, 1, 1], [], []>} : vector<16x16xf32>, vector<16x8xf32>, vector<16x8xf32> -> vector<16x8xf32>
    %cst_69 = arith.constant 0.000000e+00 : f32
    %173 = vector.broadcast %cst_69 : f32 to vector<16x8xf32>
    %174 = arith.cmpf ogt, %172, %173 : vector<16x8xf32>
    %175 = math.exp %172 : vector<16x8xf32>
    %cst_70 = arith.constant 1.000000e+00 : f32
    %176 = vector.broadcast %cst_70 : f32 to vector<16x8xf32>
    %177 = arith.subf %175, %176 : vector<16x8xf32>
    %178 = arith.select %174, %172, %177 : vector<16x8xi1>, vector<16x8xf32>
    %179 = vector.extract_strided_slice %2 {offsets = [8, 0], sizes = [8, 128], strides = [1, 1]} : vector<16x128xf32> to vector<8x128xf32>
    %cst_71 = arith.constant dense<0.000000e+00> : vector<16x128xf32>
    %180 = tpu.matmul %178, %179, %cst_71 {dimension_numbers = #tpu.dot_dimension_numbers<[1], [0], [0], [1], [0, 0, 1, 1], [], []>} : vector<16x8xf32>, vector<8x128xf32>, vector<16x128xf32> -> vector<16x128xf32>
    %181 = arith.addf %148, %180 : vector<16x128xf32>
    %c0_72 = arith.constant 0 : index
    %c0_73 = arith.constant 0 : index
    %182 = vector.load %arg7[%c0_72, %c0_73] : memref<1x128xf32, #tpu.memory_space<vmem>>, vector<1x128xf32>
    %cst_74 = arith.constant dense<0.000000e+00> : vector<16x1xf32>
    %183 = tpu.matmul %181, %182, %cst_74 {dimension_numbers = #tpu.dot_dimension_numbers<[1], [1], [0], [0], [0, 0, 1, 0], [], []>} : vector<16x128xf32>, vector<1x128xf32>, vector<16x1xf32> -> vector<16x1xf32>
    %c0_75 = arith.constant 0 : index
    %c0_76 = arith.constant 0 : index
    %184 = vector.load %arg8[%c0_75, %c0_76] : memref<1x128xf32, #tpu.memory_space<vmem>>, vector<1x128xf32>
    %cst_77 = arith.constant dense<0.000000e+00> : vector<1x16xf32>
    %185 = tpu.matmul %184, %181, %cst_77 {dimension_numbers = #tpu.dot_dimension_numbers<[1], [1], [0], [0], [0, 0, 1, 0], [], []>} : vector<1x128xf32>, vector<16x128xf32>, vector<1x16xf32> -> vector<1x16xf32>
    %186 = vector.broadcast %183 : vector<16x1xf32> to vector<16x16xf32>
    %187 = vector.broadcast %185 : vector<1x16xf32> to vector<16x16xf32>
    %188 = arith.addf %186, %187 : vector<16x16xf32>
    %cst_78 = arith.constant 0.000000e+00 : f32
    %189 = vector.broadcast %cst_78 : f32 to vector<16x16xf32>
    %190 = arith.cmpf ogt, %188, %189 : vector<16x16xf32>
    %cst_79 = arith.constant 2.000000e-01 : f32
    %191 = vector.broadcast %cst_79 : f32 to vector<16x16xf32>
    %192 = arith.mulf %191, %188 : vector<16x16xf32>
    %193 = arith.select %190, %188, %192 : vector<16x16xi1>, vector<16x16xf32>
    %cst_80 = arith.constant -9.000000e+15 : f32
    %194 = vector.broadcast %cst_80 : f32 to vector<16x16xf32>
    %195 = arith.select %114, %193, %194 : vector<16x16xi1>, vector<16x16xf32>
    %cst_81 = arith.constant dense<0xFF800000> : vector<16xf32>
    %196 = vector.multi_reduction <maximumf>, %195, %cst_81 [1] : vector<16x16xf32> to vector<16xf32>
    %197 = vector.shape_cast %196 : vector<16xf32> to vector<16x1xf32>
    %198 = vector.broadcast %197 : vector<16x1xf32> to vector<16x16xf32>
    %199 = arith.subf %195, %198 : vector<16x16xf32>
    %200 = math.exp %199 : vector<16x16xf32>
    %cst_82 = arith.constant dense<0.000000e+00> : vector<16xf32>
    %201 = vector.multi_reduction <add>, %200, %cst_82 [1] : vector<16x16xf32> to vector<16xf32>
    %202 = vector.shape_cast %201 : vector<16xf32> to vector<16x1xf32>
    %203 = tpu.reciprocal %202 {approx = true} : vector<16x1xf32> -> vector<16x1xf32>
    %204 = vector.broadcast %203 : vector<16x1xf32> to vector<16x16xf32>
    %205 = arith.mulf %200, %204 : vector<16x16xf32>
    %cst_83 = arith.constant dense<0.000000e+00> : vector<16x128xf32>
    %206 = tpu.matmul %205, %181, %cst_83 {dimension_numbers = #tpu.dot_dimension_numbers<[0], [0], [1], [1], [0, 1, 1, 1], [], []>} : vector<16x16xf32>, vector<16x128xf32>, vector<16x128xf32> -> vector<16x128xf32>
    %cst_84 = arith.constant 0.000000e+00 : f32
    %207 = vector.broadcast %cst_84 : f32 to vector<16x128xf32>
    %208 = arith.cmpf ogt, %206, %207 : vector<16x128xf32>
    %209 = math.exp %206 : vector<16x128xf32>
    %cst_85 = arith.constant 1.000000e+00 : f32
    %210 = vector.broadcast %cst_85 : f32 to vector<16x128xf32>
    %211 = arith.subf %209, %210 : vector<16x128xf32>
    %212 = arith.select %208, %206, %211 : vector<16x128xi1>, vector<16x128xf32>
    %c16 = arith.constant 16 : index
    %c0_86 = arith.constant 0 : index
    %213 = vector.load %arg9[%c16, %c0_86] : memref<32x128xf32, #tpu.memory_space<vmem>>, vector<16x128xf32>
    tpu.vector_store %arg9[%c16, %c0_86], %212 {strides = array<i32>} : memref<32x128xf32, #tpu.memory_space<vmem>>, vector<16x128xf32>,
    return
  }
  func.func @transform_0(%arg0: i32) -> (i32, i32) {
    %c0_i32 = arith.constant 0 : i32
    %c0_i32_0 = arith.constant 0 : i32
    return %arg0, %c0_i32 : i32, i32
  }
  func.func @transform_1(%arg0: i32) -> (i32, i32, i32) {
    %c0_i32 = arith.constant 0 : i32
    %c0_i32_0 = arith.constant 0 : i32
    %c0_i32_1 = arith.constant 0 : i32
    return %arg0, %c0_i32, %c0_i32_0 : i32, i32, i32
  }
  func.func @transform_2(%arg0: i32) -> (i32, i32) {
    %c0_i32 = arith.constant 0 : i32
    %c0_i32_0 = arith.constant 0 : i32
    %c0_i32_1 = arith.constant 0 : i32
    return %c0_i32, %c0_i32_0 : i32, i32
  }
  func.func @transform_3(%arg0: i32) -> (i32, i32) {
    %c0_i32 = arith.constant 0 : i32
    %c0_i32_0 = arith.constant 0 : i32
    %c0_i32_1 = arith.constant 0 : i32
    return %c0_i32, %c0_i32_0 : i32, i32
  }
  func.func @transform_4(%arg0: i32) -> (i32, i32) {
    %c0_i32 = arith.constant 0 : i32
    %c0_i32_0 = arith.constant 0 : i32
    %c0_i32_1 = arith.constant 0 : i32
    return %c0_i32, %c0_i32_0 : i32, i32
  }
  func.func @transform_5(%arg0: i32) -> (i32, i32) {
    %c0_i32 = arith.constant 0 : i32
    %c0_i32_0 = arith.constant 0 : i32
    %c0_i32_1 = arith.constant 0 : i32
    return %c0_i32, %c0_i32_0 : i32, i32
  }
  func.func @transform_6(%arg0: i32) -> (i32, i32) {
    %c0_i32 = arith.constant 0 : i32
    %c0_i32_0 = arith.constant 0 : i32
    %c0_i32_1 = arith.constant 0 : i32
    return %c0_i32, %c0_i32_0 : i32, i32
  }
  func.func @transform_7(%arg0: i32) -> (i32, i32) {
    %c0_i32 = arith.constant 0 : i32
    %c0_i32_0 = arith.constant 0 : i32
    %c0_i32_1 = arith.constant 0 : i32
    return %c0_i32, %c0_i32_0 : i32, i32
  }
  func.func @transform_8(%arg0: i32) -> (i32, i32) {
    %c0_i32 = arith.constant 0 : i32
    %c0_i32_0 = arith.constant 0 : i32
    return %arg0, %c0_i32 : i32, i32
  }
}

</mosaic_0001>

<bundles_post_ra>
// kernel: tpu_custom_call.1
= control target key start
LH: loop header
LB: loop body
LE: loop exit
PB: predicated region body
PF: predicated region fallthrough
CT: control target
= control target key end

     0   :  { %13 = vsyncpa [#allocation3], 0  ;;  %s2568_s0 = inlined_call_operand.vmem [shape: f32[32,8], index: 0, kind: input, shape index: {}]   ;;  %s2569_s1 = inlined_call_operand.vmem [shape: f32[2,16,16], index: 1, kind: input, shape index: {}]   ;;  %s2570_s2 = inlined_call_operand.hbm [shape: f32[8,16], index: 2, kind: input, shape index: {}]   ;;  %s2571_s3 = inlined_call_operand.vmem [shape: f32[2,16], index: 3, kind: input, shape index: {}]   ;;  %s2572_s4 = inlined_call_operand.vmem [shape: f32[2,16], index: 4, kind: input, shape index: {}]   ;;  %s2573_s5 = inlined_call_operand.vmem [shape: f32[16,128], index: 5, kind: input, shape index: {}]   ;;  %s2574_s6 = inlined_call_operand.vmem [shape: f32[1,128], index: 6, kind: input, shape index: {}]   ;;  %s2575_s7 = inlined_call_operand.vmem [shape: f32[1,128], index: 7, kind: input, shape index: {}]   ;;  %s2576_s8 = inlined_call_operand.hbm [shape: f32[32,128], index: 8, kind: output, shape index: {}]  }
   0x1   :  { %14 = vsyncpa [#allocation4], 0  ;;  %s2254_s27 = smov [#allocation2]   ;;  %s2206_s9 = scalar_lea.hbm %s2570_s2, 128 }
   0x2   :  { %s25_s28 = sshll.u32 %s2254_s27, 4  ;;  %p2207_p0 = scmp.ne.s32.totalorder %s2570_s2, %s2206_s9  ;;  %s26_s28 = int_to_ptr.vmem [resolvable:$true] %s25_s28 }
   0x3   :  { %p2210_p1 = scmp.lt.u32.totalorder %s2206_s9, %s2570_s2 }
   0x5   :  { %p2212_p2 = pnand %p2210_p1, %p2207_p0 }
   0x7   :  { %2215 = shalt.err (!%p2212_p2)
}
   0x8   :  { %s2216_s14 = scalar_lea.vmem %s26_s28, 128  ;;  %p2221_p4 = scmp.lt.s32.totalorder %s26_s28, %s26_s28 }
   0x9   :  { %p2217_p3 = scmp.ne.s32.totalorder %s26_s28, %s2216_s14  ;;  %p2222_p5 = scmp.lt.s32.totalorder %s2216_s14, %s2216_s14 }
   0xb   :  { %p2223_p6 = por %p2222_p5, %p2221_p4 }
   0xd   :  { %p2224_p7 = pnand %p2223_p6, %p2217_p3 }
   0xf   :  { %2227 = shalt.err (!%p2224_p7)
}
  0x10   :  { %28 = dma.hbm_to_vmem [thread:$0]  %s2570_s2, 128, %s26_s28, [#allocation3]  }
  0x11   :  { %2250 = dma.done.wait [#allocation3], 128  }
  0x12   :  { %2251 = vsyncadd [#allocation3], 4294967168  ;;  %vm49_vm0 = vcmask 64512   ;;  %vm148_vm1 = vcmask 130048   ;;  %v46_v0 = vld [vmem:[#allocation2] sm:$0xff]  ;;  %v42_v1 = vld [vmem:[%s2568_s0] sm:$0xff]  ;;  %v337_v25 = vlaneseq }
  0x13   :  { %v43_v2 = vld [vmem:[%s2568_s0 + $0x8] sm:$0xff]  ;;  %1962 = vmatprep.subr.mxu0 %v46_v0  ;;  %1964 = vmatprep.mubr.msk.f32.mxu0 %vm49_vm0, %v42_v1  ;;  %v44_v3 = vld [vmem:[%s2568_s0 + $0x10] sm:$0xff]  ;;  %v147_v4 = vld [vmem:[%s2571_s3] sm:$0x3]  ;;  %v2255_v6 = vmov 0.0|0.0   ;;  %vm2256_vm2 = vmmov 0  }
  0x14   :  { %1963 = vmatpush3.msra.mxu0 %v46_v0  ;;  %1970 = vmatprep.subr.msk.mxu1 %vm148_vm1, %v147_v4  ;;  %v45_v5 = vld [vmem:[%s2568_s0 + $0x18] sm:$0xff]  ;;  %v2257_v7 = vmov 0.0   ;;  %vm2067_vm3 = vmpackc.low %vm148_vm1, %vm148_vm1  ;;  %v249_v16 = vld [vmem:[%s2572_s4] sm:$0x3]  ;;  %v2258_v17 = vmov 1   ;;  %v2259_v18 = vmov 0  }
  0x15   :  { %1965 = vmatmul.mubr.msk.f32.vlgmr.msra.gmra.mrb[0].mxu0 %vm49_vm0, %v43_v2  ;;  %1971 = vmatpush3.xpose.msk.msra.mxu1 %vm148_vm1, %v147_v4  ;;  %v338_v26 = vshrl.u32 %v337_v25, 7  ;;  %v2399_v31 = vld [vmem:[%s2569_s1] sm:$0xff]  ;;  %v2407_v36 = vld [vmem:[%s2569_s1 + $0x8] sm:$0xff]  ;;  %s2260_s29 = smov 120   ;;  %s2261_s30 = smov 112  }
  0x16   :  { %1967 = vmatprep.mubr.msk.f32.mxu0 %vm49_vm0, %v44_v3  ;;  %2065 = vmatprep.subr.bf16.mxu0 %v2255_v6  ;;  %vm325_vm4 = vcmp.gt.f32.partialorder %v2399_v31, 0.0  ;;  %vm326_vm7 = vcmp.gt.f32.partialorder %v2407_v36, 0.0 }
  0x17   :  { %2119 = vset.pattern.permute.xlu1 %v2258_v17  ;;  %2118 = vset.pattern.permute.xlu0 %v2259_v18  ;;  %v2389_v27 = vsub.s32 0, %v338_v26  ;;  %v506_v28 = vsub.s32 1, %v338_v26 }
  0x19   :  { %1968 = vmatmul.mubr.msk.f32.gmra.mrb[2].mxu0 %vm49_vm0, %v45_v5 }
  0x1a   :  { %1986 = vmatprep.mubr.msk.f32.mxu0 %vm2256_vm2, %v2257_v7 }
  0xe8   :  { %v2346_v8 = vpop.f32.mrb[0].mxu0 }
  0xe9   :  { %v2348_v9 = vpop.f32.mrb[1].mxu0 }
  0xea   :  { %v2120_v10 = vpack.i.bf16 %v2346_v8, %v2348_v9  ;;  %v2066_v11 = vpack.c.bf16 %v2346_v8, %v2348_v9  ;;  %1972 = vmatprep.mubr.msk.f32.mxu1 %vm148_vm1, %v2348_v9 }
  0xeb   :  { %1973 = vmatmul.mubr.msk.f32.vlgmr.msra.gmra.mrb[0].mxu1 %vm148_vm1, %v2346_v8 }
  0xec   :  { %2068 = vmatpush3.bf16.xpose.msk.msra.mxu0 %vm2067_vm3, %v2066_v11  ;;  %2074 = vmatprep.subr.bf16.mxu1 %v2066_v11  ;;  %v2360_v12 = vpop.f32.mrb[2].mxu0 }
  0xed   :  { %2076 = vmatpush3.bf16.msra.mxu1 %v2066_v11  ;;  %v2362_v13 = vpop.f32.mrb[3].mxu0  ;;  %2069 = vmatprep.subr.bf16.mxu0 %v2255_v6 }
  0xee   :  { %v2128_v14 = vpack.i.bf16 %v2360_v12, %v2362_v13  ;;  %v2369_v15 = vpack.c.bf16 %v2360_v12, %v2362_v13  ;;  %1975 = vmatprep.mubr.msk.f32.mxu1 %vm148_vm1, %v2362_v13 }
  0xef   :  { %1976 = vmatmul.mubr.msk.f32.gmra.mrb[2].mxu1 %vm148_vm1, %v2360_v12 }
  0xf4   :  { %2072 = vmatpush3.bf16.xpose.msk.msra.mxu0 %vm2067_vm3, %v2369_v15 }
  0xf5   :  { %2081 = vmatprep.subr.bf16.mxu0 %v2255_v6 }
  0xfb   :  { %1987 = vmatmul.mubr.msk.f32.vlgmr.msra.gmra.mrb[4].mxu0 %vm148_vm1, %v249_v16 }
  0xfc   :  { %2017 = vmatprep.mubr.msk.f32.mxu0 %vm2256_vm2, %v2257_v7 }
 0x1be   :  { %v1974_v19 = vpop.f32.mrb[0].mxu1 }
 0x1bf   :  { %v230_v20 = vpop.f32.mrb[1].mxu1 }
 0x1c0   :  { %497 = vperm.xlu1 %2119, %v230_v20   ;;  %329 = vperm.xlu0 %2118, %v230_v20  }
 0x1c2   :  { %v2385_v21 = vpop.f32.mrb[2].mxu1 }
 0x1c3   :  { %v2387_v22 = vpop.f32.mrb[3].mxu1 }
 0x1c4   :  { %501 = vperm.xlu1 %2119, %v1974_v19   ;;  %334 = vperm.xlu0 %2118, %v1974_v19  }
 0x1ce   :  { %v319_v23 = vpop.f32.mrb[4].mxu0 }
 0x1cf   :  { %v1988_v24 = vpop.f32.mrb[5].mxu0  ;;  %v2392_v29 = vrot.slane %v319_v23, %v2389_v27  ;;  %v2394_v30 = vrot.slane %v319_v23, %v506_v28 }
 0x23f   :  { %v498_v32 = vpop.permute.xlu1 %497  ;;  %v330_v33 = vpop.permute.xlu0 %329 }
 0x240   :  { %v508_v34 = vadd.f32 %v2394_v30, %v498_v32  ;;  %v341_v35 = vadd.f32 %v2392_v29, %v330_v33 }
 0x242   :  { %v512_v37 = vmul.f32 0.2, %v508_v34  ;;  %v345_v38 = vmul.f32 0.2, %v341_v35  ;;  %vm343_vm5 = vcmp.gt.f32.partialorder %v341_v35, 0.0  ;;  %vm510_vm6 = vcmp.gt.f32.partialorder %v508_v34, 0.0 }
 0x243   :  { %v502_v39 = vpop.permute.xlu1 %501  ;;  %v335_v40 = vpop.permute.xlu0 %334 }
 0x244   :  { %v509_v41 = vadd.f32 %v2394_v30, %v502_v39  ;;  %v342_v42 = vadd.f32 %v2392_v29, %v335_v40  ;;  %v347_v43 = vsel %vm343_vm5, %v341_v35, %v345_v38  ;;  %v514_v44 = vsel %vm510_vm6, %v508_v34, %v512_v37 }
 0x245   :  { %v349_v45 = vsel %vm325_vm4, %v347_v43, -9e+15  ;;  %v516_v49 = vsel %vm325_vm4, %v514_v44, -9e+15 }
 0x246   :  { %v513_v46 = vmul.f32 0.2, %v509_v41  ;;  %v346_v47 = vmul.f32 0.2, %v342_v42  ;;  %v351_v48 = vsel %vm148_vm1, %v349_v45, -inf  ;;  %vm344_vm8 = vcmp.gt.f32.partialorder %v342_v42, 0.0 }
 0x247   :  { %352 = vmax.xlane.f32.xlu0 %v351_v48  ;;  %vm511_vm9 = vcmp.gt.f32.partialorder %v509_v41, 0.0  ;;  %v518_v54 = vsel %vm148_vm1, %v516_v49, -inf }
 0x248   :  { %v348_v50 = vsel %vm344_vm8, %v342_v42, %v346_v47  ;;  %v515_v51 = vsel %vm511_vm9, %v509_v41, %v513_v46 }
 0x249   :  { %v350_v52 = vsel %vm326_vm7, %v348_v50, -9e+15  ;;  %v517_v55 = vsel %vm326_vm7, %v515_v51, -9e+15 }
 0x24a   :  { %v354_v53 = vsel %vm148_vm1, %v350_v52, -inf  ;;  %v521_v56 = vsel %vm148_vm1, %v517_v55, -inf }
 0x24b   :  { %355 = vmax.xlane.f32.xlu1 %v354_v53  ;;  %519 = vmax.xlane.f32.xlu0 %v518_v54  ;;  %v2450_v53 = vld [vmem:[%s2573_s5 + $0x8] sm:$0xff]  ;;  %v2457_v54 = vld [vmem:[%s2573_s5] sm:$0xff] }
 0x24f   :  { %522 = vmax.xlane.f32.xlu0 %v521_v56 }
 0x2d4   :  { %v353_v57 = vpop.xlane.xlu0 %352 }
 0x2d5   :  { %v357_v58 = vsub.f32 %v349_v45, %v353_v57 }
 0x2d7   :  { %v359_v59 = vmul.f32 1.442695, %v357_v58 }
 0x2d8   :  { %v356_v60 = vpop.xlane.xlu1 %355  ;;  %v520_v61 = vpop.xlane.xlu0 %519 }
 0x2d9   :  { %2134 = vpow2.f32 %v359_v59  ;;  %v358_v62 = vsub.f32 %v350_v52, %v356_v60  ;;  %v524_v63 = vsub.f32 %v516_v49, %v520_v61 }
 0x2db   :  { %v361_v0 = vmul.f32 1.442695, %v358_v62  ;;  %v526_v1 = vmul.f32 1.442695, %v524_v63 }
 0x2dc   :  { %v523_v2 = vpop.xlane.xlu0 %522 }
 0x2dd   :  { %2136 = vpow2.f32 %v361_v0  ;;  %v525_v3 = vsub.f32 %v517_v55, %v523_v2 }
 0x2de   :  { %2138 = vpow2.f32 %v526_v1 }
 0x2df   :  { %v528_v4 = vmul.f32 1.442695, %v525_v3 }
 0x2e1   :  { %2140 = vpow2.f32 %v528_v4 }
 0x2e3   :  { %v2135_v5 = vpop.eup %2134 }
 0x2e4   :  { %v363_v11 = vsel %vm148_vm1, %v2135_v5, 0.0 }
 0x2e5   :  { %364 = vadd.xlane.f32.xlu1 %v363_v11 }
 0x2e7   :  { %v2137_v16 = vpop.eup %2136 }
 0x2e8   :  { %v2139_v19 = vpop.eup %2138  ;;  %v366_v20 = vsel %vm148_vm1, %v2137_v16, 0.0 }
 0x2e9   :  { %367 = vadd.xlane.f32.xlu0 %v366_v20  ;;  %v530_v23 = vsel %vm148_vm1, %v2139_v19, 0.0 }
 0x2ea   :  { %531 = vadd.xlane.f32.xlu1 %v530_v23 }
 0x2eb   :  { %v2141_v24 = vpop.eup %2140 }
 0x2ec   :  { %v533_v25 = vsel %vm148_vm1, %v2141_v24, 0.0 }
 0x2ed   :  { %534 = vadd.xlane.f32.xlu0 %v533_v25 }
 0x2fb   :  { %2121 = vrot.lane.b32.xlu1 %v2120_v10, %s2260_s29 }
 0x372   :  { %v365_v26 = vpop.xlane.xlu1 %364 }
 0x373   :  { %2142 = vrcp.f32 %v365_v26 }
 0x376   :  { %v368_v28 = vpop.xlane.xlu0 %367 }
 0x377   :  { %v532_v32 = vpop.xlane.xlu1 %531  ;;  %2144 = vrcp.f32 %v368_v28 }
 0x378   :  { %2146 = vrcp.f32 %v532_v32 }
 0x37a   :  { %v535_v33 = vpop.xlane.xlu0 %534 }
 0x37b   :  { %v2122_v34 = vpop.permute.xlu1 %2121  ;;  %2148 = vrcp.f32 %v535_v33 }
 0x37c   :  { %v2124_v35 = vunpack.i.h.bf16 %v2122_v34  ;;  %v2123_v37 = vunpack.i.l.bf16 %v2122_v34 }
 0x37d   :  { %v2143_v38 = vpop.eup %2142 }
 0x37e   :  { %v2077_v39 = vpack.c.bf16 %v2124_v35, %v2123_v37  ;;  %v371_v40 = vmul.f32 %v2143_v38, %v2135_v5  ;;  %v844_v35 = vld [vmem:[%s2575_s7] sm:$0x1] }
 0x380   :  { %2078 = vmatprep.subr.bf16.mxu1 %v2077_v39  ;;  %373 = vxpose.xlu0.b32.start [1/2] (short) (narrow) %v371_v40, 16 }
 0x381   :  { %v2145_v41 = vpop.eup %2144 }
 0x382   :  { %v2147_v42 = vpop.eup %2146  ;;  %v372_v8 = vmul.f32 %v2145_v41, %v2137_v16 }
 0x383   :  { %v538_v9 = vmul.f32 %v2147_v42, %v2139_v19 }
 0x384   :  { %374 = vxpose.xlu0.b32.end [2/2] (short) (narrow) %v372_v8, 16 }
 0x385   :  { %v2149_v10 = vpop.eup %2148  ;;  %540 = vxpose.xlu1.b32.start [1/2] (short) (narrow) %v538_v9, 16 }
 0x386   :  { %v539_v43 = vmul.f32 %v2149_v10, %v2141_v24  ;;  %v2468_v24 = vld [vmem:[%s2574_s6] ss:$0 sm:$0xff] }
 0x389   :  { %541 = vxpose.xlu1.b32.end [2/2] (short) (narrow) %v539_v43, 16 }
 0x3a7   :  { %1259 = vperm.xlu1 %2119, %v2385_v21  }
 0x3ab   :  { %2126 = vset.pattern.permute.xlu1 %v2259_v18 }
 0x3ac   :  { %1083 = vperm.xlu1 %2126, %v2387_v22  }
 0x3ad   :  { %2125 = vset.pattern.permute.xlu0 %v2258_v17 }
 0x3ae   :  { %1255 = vperm.xlu0 %2125, %v2387_v22  }
 0x3b2   :  { %2127 = vset.pattern.permute.xlu0 %v2259_v18 }
 0x3b3   :  { %1088 = vperm.xlu0 %2127, %v2385_v21  }
 0x400   :  { %v389_v44 = vpop.trf.xlu0 }
 0x401   :  { %1993 = vmatprep.mubr.msk.f32.mxu1 %vm148_vm1, %v389_v44 }
 0x404   :  { %v390_v45 = vpop.trf.xlu0 }
 0x405   :  { %v556_v46 = vpop.trf.xlu1  ;;  %1994 = vmatmul.mubr.msk.f32.vlgmr.msra.gmra.mrb[4].mxu1 %vm148_vm1, %v390_v45 }
 0x406   :  { %2080 = vmatpush3.bf16.msra.mxu1 %v2077_v39  ;;  %2000 = vmatprep.mubr.msk.f32.mxu1 %vm148_vm1, %v556_v46 }
 0x407   :  { %2003 = vmatprep.subr.mxu1 %v2450_v53 }
 0x409   :  { %v557_v47 = vpop.trf.xlu1 }
 0x40a   :  { %2001 = vmatmul.mubr.msk.f32.vlgmr.msra.gmra.mrb[6].mxu1 %vm148_vm1, %v557_v47 }
 0x40b   :  { %2004 = vmatpush3.msra.mxu1 %v2450_v53 }
 0x40c   :  { %2008 = vmatprep.subr.mxu1 %v2457_v54 }
 0x426   :  { %v1260_v48 = vpop.permute.xlu1 %1259 }
 0x427   :  { %v1263_v22 = vadd.f32 %v1260_v48, %v2394_v30 }
 0x429   :  { %v1267_v49 = vmul.f32 0.2, %v1263_v22  ;;  %vm1265_vm10 = vcmp.gt.f32.partialorder %v1263_v22, 0.0 }
 0x42b   :  { %v1084_v18 = vpop.permute.xlu1 %1083  ;;  %v1269_v21 = vsel %vm1265_vm10, %v1263_v22, %v1267_v49  ;;  %v2486_v22 = vld [vmem:[%s2569_s1 + $0x18] sm:$0xff]  ;;  %v2491_v49 = vld [vmem:[%s2569_s1 + $0x10] sm:$0xff] }
 0x42c   :  { %v1091_v50 = vadd.f32 %v1084_v18, %v2392_v29  ;;  %1274 = vrot.lane.b32.xlu1 %v1269_v21, %s2261_s30  ;;  %vm1080_vm9 = vcmp.gt.f32.partialorder %v2486_v22, 0.0  ;;  %vm1079_vm10 = vcmp.gt.f32.partialorder %v2491_v49, 0.0 }
 0x42d   :  { %v1256_v34 = vpop.permute.xlu0 %1255 }
 0x42e   :  { %v1095_v51 = vmul.f32 0.2, %v1091_v50  ;;  %vm1093_vm11 = vcmp.gt.f32.partialorder %v1091_v50, 0.0  ;;  %v1262_v39 = vadd.f32 %v1256_v34, %v2394_v30 }
 0x430   :  { %v1097_v52 = vsel %vm1093_vm11, %v1091_v50, %v1095_v51  ;;  %v1266_v41 = vmul.f32 0.2, %v1262_v39  ;;  %vm1264_vm5 = vcmp.gt.f32.partialorder %v1262_v39, 0.0 }
 0x431   :  { %1101 = vrot.lane.b32.xlu1 %v1097_v52, %s2261_s30 }
 0x432   :  { %v1089_v37 = vpop.permute.xlu0 %1088  ;;  %v1268_v8 = vsel %vm1264_vm5, %v1262_v39, %v1266_v41 }
 0x433   :  { %v1092_v38 = vadd.f32 %v1089_v37, %v2392_v29 }
 0x435   :  { %v1096_v40 = vmul.f32 0.2, %v1092_v38  ;;  %vm1094_vm3 = vcmp.gt.f32.partialorder %v1092_v38, 0.0 }
 0x437   :  { %v1098_v42 = vsel %vm1094_vm3, %v1092_v38, %v1096_v40 }
 0x49e   :  { %v1275_v9 = vpop.permute.xlu1 %1274 }
 0x4a3   :  { %v1102_v10 = vpop.permute.xlu1 %1101 }
 0x4d8   :  { %v1995_v55 = vpop.f32.mrb[4].mxu1 }
 0x4d9   :  { %v477_v56 = vpop.f32.mrb[5].mxu1  ;;  %v490_v62 = vmul.f32 1.442695, %v1995_v55  ;;  %vm487_vm15 = vcmp.gt.f32.partialorder %v1995_v55, 0.0 }
 0x4da   :  { %v488_v57 = vmul.f32 1.442695, %v477_v56  ;;  %vm486_vm14 = vcmp.gt.f32.partialorder %v477_v56, 0.0 }
 0x4dc   :  { %2150 = vpow2.f32 %v488_v57 }
 0x4dd   :  { %v2002_v58 = vpop.f32.mrb[6].mxu1 }
 0x4de   :  { %v663_v59 = vmul.f32 1.442695, %v2002_v58  ;;  %v650_v60 = vpop.f32.mrb[7].mxu1  ;;  %vm660_vm13 = vcmp.gt.f32.partialorder %v2002_v58, 0.0 }
 0x4df   :  { %v661_v61 = vmul.f32 1.442695, %v650_v60  ;;  %vm659_vm12 = vcmp.gt.f32.partialorder %v650_v60, 0.0 }
 0x4e0   :  { %2152 = vpow2.f32 %v663_v59 }
 0x4e1   :  { %2154 = vpow2.f32 %v661_v61 }
 0x4e2   :  { %2156 = vpow2.f32 %v490_v62  ;;  %v1107_v62 = vsel %vm1079_vm10, %v1102_v10, -9e+15 }
 0x4e6   :  { %v2151_v63 = vpop.eup %2150 }
 0x4e7   :  { %v1871_v3 = vadd.f32 -1.0, %v2151_v63  ;;  %v1109_v63 = vsel %vm148_vm1, %v1107_v62, -inf }
 0x4e9   :  { %v494_v19 = vsel %vm486_vm14, %v477_v56, %v1871_v3 }
 0x4ea   :  { %v2153_v0 = vpop.eup %2152 }
 0x4eb   :  { %v2155_v1 = vpop.eup %2154  ;;  %v1876_v2 = vadd.f32 -1.0, %v2153_v0 }
 0x4ec   :  { %v1875_v4 = vadd.f32 -1.0, %v2155_v1  ;;  %v2157_v16 = vpop.eup %2156 }
 0x4ed   :  { %v668_v11 = vsel %vm660_vm13, %v2002_v58, %v1876_v2  ;;  %v1872_v20 = vadd.f32 -1.0, %v2157_v16 }
 0x4ee   :  { %v667_v5 = vsel %vm659_vm12, %v650_v60, %v1875_v4  ;;  %v1279_v60 = vsel %vm1080_vm9, %v1275_v9, -9e+15 }
 0x4ef   :  { %2005 = vmatprep.mubr.msk.f32.mxu1 %vm49_vm0, %v667_v5  ;;  %v495_v23 = vsel %vm487_vm15, %v1995_v55, %v1872_v20  ;;  %v1283_v61 = vsel %vm148_vm1, %v1279_v60, -inf }
 0x4f0   :  { %2006 = vmatmul.mubr.msk.f32.vlgmr.msra.gmra.mrb[8].mxu1 %vm49_vm0, %v668_v11 }
 0x4f1   :  { %2009 = vmatpush3.msra.mxu1 %v2457_v54  ;;  %2010 = vmatprep.mubr.msk.f32.mxu1 %vm49_vm0, %v494_v19 }
 0x4f8   :  { %2011 = vmatmul.mubr.msk.f32.vlgmr.msra.gmra.mrb[8].mxu1 %vm49_vm0, %v495_v23 }
 0x5cb   :  { %v2012_v25 = vpop.f32.mrb[8].mxu1 }
 0x5cc   :  { %v822_v26 = vpop.f32.mrb[9].mxu1  ;;  %v839_v28 = vmul.f32 %v2012_v25, %v2468_v24 }
 0x5cd   :  { %v2082_v32 = vpack.c.bf16 %v2012_v25, %v822_v26  ;;  %v838_v33 = vmul.f32 %v2468_v24, %v822_v26 }
 0x5ce   :  { %842 = vadd.xlane.f32.xlu0 %v839_v28 }
 0x5cf   :  { %2083 = vmatpush3.bf16.xpose.msra.mxu0 %v2082_v32  ;;  %2085 = vmatprep.subr.bf16.mxu1 %v2082_v32 }
 0x5d0   :  { %840 = vadd.xlane.f32.xlu1 %v838_v33  ;;  %2087 = vmatpush3.bf16.msra.mxu1 %v2082_v32 }
 0x5d1   :  { %2089 = vmatprep.subr.bf16.mxu0 %v2369_v15 }
 0x5d6   :  { %2018 = vmatmul.mubr.f32.vlgmr.msra.gmra.mrb[6].mxu0 %v844_v35 }
 0x5d7   :  { %2091 = vmatpush3.bf16.msra.mxu0 %v2369_v15 }
 0x5d8   :  { %2041 = vmatprep.subr.mxu0 %v2450_v53 }
 0x5e1   :  { %1103 = vrot.lane.b32.xlu1 %v1098_v42, %s2261_s30 }
 0x5e4   :  { %1272 = vrot.lane.b32.xlu0 %v1268_v8, %s2261_s30 }
 0x65b   :  { %v843_v43 = vpop.xlane.xlu0 %842 }
 0x65d   :  { %v841_v44 = vpop.xlane.xlu1 %840 }
 0x65f   :  { %v1273_v18 = vpop.permute.xlu0 %1272 }
 0x660   :  { %v1278_v58 = vsel %vm1079_vm10, %v1273_v18, -9e+15 }
 0x661   :  { %v1104_v21 = vpop.permute.xlu1 %1103  ;;  %v1280_v36 = vsel %vm148_vm1, %v1278_v58, -inf }
 0x662   :  { %v1108_v59 = vsel %vm1080_vm9, %v1104_v21, -9e+15 }
 0x663   :  { %v1112_v31 = vsel %vm148_vm1, %v1108_v59, -inf }
 0x6a9   :  { %v911_v15 = vpop.f32.mrb[6].mxu0 }
 0x6aa   :  { %v918_v29 = vrot.slane %v911_v15, %v2389_v27  ;;  %v2019_v45 = vpop.f32.mrb[7].mxu0 }
 0x6ac   :  { %v919_v46 = vadd.f32 %v918_v29, %v841_v44  ;;  %v920_v30 = vadd.f32 %v918_v29, %v843_v43 }
 0x6ae   :  { %vm922_vm6 = vcmp.gt.f32.partialorder %v920_v30, 0.0  ;;  %v924_v47 = vmul.f32 0.2, %v920_v30  ;;  %vm921_vm8 = vcmp.gt.f32.partialorder %v919_v46, 0.0  ;;  %v923_v48 = vmul.f32 0.2, %v919_v46 }
 0x6b0   :  { %v926_v50 = vsel %vm922_vm6, %v920_v30, %v924_v47  ;;  %v925_v51 = vsel %vm921_vm8, %v919_v46, %v923_v48 }
 0x6b1   :  { %v928_v52 = vsel %vm326_vm7, %v926_v50, -9e+15  ;;  %v927_v55 = vsel %vm325_vm4, %v925_v51, -9e+15 }
 0x6b2   :  { %v932_v56 = vsel %vm148_vm1, %v928_v52, -inf  ;;  %v929_v57 = vsel %vm148_vm1, %v927_v55, -inf }
 0x6b3   :  { %933 = vmax.xlane.f32.xlu1 %v932_v56  ;;  %930 = vmax.xlane.f32.xlu0 %v929_v57 }
 0x6b7   :  { %1281 = vmax.xlane.f32.xlu0 %v1280_v36  ;;  %1113 = vmax.xlane.f32.xlu1 %v1112_v31 }
 0x6bb   :  { %1284 = vmax.xlane.f32.xlu0 %v1283_v61 }
 0x6bf   :  { %1110 = vmax.xlane.f32.xlu0 %v1109_v63 }
 0x740   :  { %v931_v0 = vpop.xlane.xlu0 %930  ;;  %v934_v1 = vpop.xlane.xlu1 %933 }
 0x741   :  { %v935_v2 = vsub.f32 %v927_v55, %v931_v0  ;;  %v936_v3 = vsub.f32 %v928_v52, %v934_v1 }
 0x743   :  { %v937_v4 = vmul.f32 1.442695, %v935_v2  ;;  %v939_v5 = vmul.f32 1.442695, %v936_v3 }
 0x744   :  { %v1282_v11 = vpop.xlane.xlu0 %1281  ;;  %v1114_v16 = vpop.xlane.xlu1 %1113 }
 0x745   :  { %2158 = vpow2.f32 %v937_v4  ;;  %v1286_v19 = vsub.f32 %v1278_v58, %v1282_v11  ;;  %v1116_v23 = vsub.f32 %v1108_v59, %v1114_v16 }
 0x746   :  { %2160 = vpow2.f32 %v939_v5 }
 0x747   :  { %v1288_v20 = vmul.f32 1.442695, %v1286_v19  ;;  %v1119_v28 = vmul.f32 1.442695, %v1116_v23 }
 0x748   :  { %v1285_v25 = vpop.xlane.xlu0 %1284 }
 0x749   :  { %2162 = vpow2.f32 %v1288_v20  ;;  %v1287_v26 = vsub.f32 %v1279_v60, %v1285_v25 }
 0x74b   :  { %v1290_v32 = vmul.f32 1.442695, %v1287_v26 }
 0x74c   :  { %v1111_v33 = vpop.xlane.xlu0 %1110 }
 0x74d   :  { %2164 = vpow2.f32 %v1290_v32  ;;  %v1115_v34 = vsub.f32 %v1107_v62, %v1111_v33 }
 0x74e   :  { %2166 = vpow2.f32 %v1119_v28 }
 0x74f   :  { %v2159_v35 = vpop.eup %2158  ;;  %v1117_v37 = vmul.f32 1.442695, %v1115_v34 }
 0x750   :  { %v2161_v38 = vpop.eup %2160  ;;  %v941_v39 = vsel %vm148_vm1, %v2159_v35, 0.0 }
 0x751   :  { %2168 = vpow2.f32 %v1117_v37  ;;  %942 = vadd.xlane.f32.xlu0 %v941_v39  ;;  %v944_v40 = vsel %vm148_vm1, %v2161_v38, 0.0 }
 0x752   :  { %945 = vadd.xlane.f32.xlu1 %v944_v40 }
 0x753   :  { %v2163_v41 = vpop.eup %2162 }
 0x754   :  { %v1292_v42 = vsel %vm148_vm1, %v2163_v41, 0.0 }
 0x755   :  { %1293 = vadd.xlane.f32.xlu0 %v1292_v42 }
 0x757   :  { %v2165_v8 = vpop.eup %2164 }
 0x758   :  { %v1295_v9 = vsel %vm148_vm1, %v2165_v8, 0.0  ;;  %v2167_v10 = vpop.eup %2166 }
 0x759   :  { %1296 = vadd.xlane.f32.xlu1 %v1295_v9  ;;  %v1124_v44 = vsel %vm148_vm1, %v2167_v10, 0.0 }
 0x75b   :  { %v2169_v43 = vpop.eup %2168 }
 0x75c   :  { %v1121_v15 = vsel %vm148_vm1, %v2169_v43, 0.0 }
 0x75d   :  { %1122 = vadd.xlane.f32.xlu0 %v1121_v15  ;;  %1125 = vadd.xlane.f32.xlu1 %v1124_v44 }
 0x773   :  { %2129 = vrot.lane.b32.xlu0 %v2128_v14, %s2260_s29 }
 0x7de   :  { %v943_v29 = vpop.xlane.xlu0 %942 }
 0x7df   :  { %2170 = vrcp.f32 %v943_v29  ;;  %v946_v45 = vpop.xlane.xlu1 %945 }
 0x7e0   :  { %2172 = vrcp.f32 %v946_v45 }
 0x7e2   :  { %v1294_v46 = vpop.xlane.xlu0 %1293 }
 0x7e3   :  { %2174 = vrcp.f32 %v1294_v46 }
 0x7e6   :  { %v1297_v30 = vpop.xlane.xlu1 %1296 }
 0x7e7   :  { %2176 = vrcp.f32 %v1297_v30 }
 0x7e9   :  { %v2171_v47 = vpop.eup %2170 }
 0x7ea   :  { %v1123_v48 = vpop.xlane.xlu0 %1122  ;;  %v1126_v18 = vpop.xlane.xlu1 %1125  ;;  %v949_v21 = vmul.f32 %v2171_v47, %v2159_v35 }
 0x7eb   :  { %v2173_v50 = vpop.eup %2172  ;;  %2178 = vrcp.f32 %v1123_v48 }
 0x7ec   :  { %951 = vxpose.xlu1.b32.start [1/2] (short) (narrow) %v949_v21, 16  ;;  %2180 = vrcp.f32 %v1126_v18  ;;  %v950_v52 = vmul.f32 %v2173_v50, %v2161_v38 }
 0x7ed   :  { %v2175_v51 = vpop.eup %2174 }
 0x7ee   :  { %v2130_v12 = vpop.permute.xlu0 %2129  ;;  %v1300_v13 = vmul.f32 %v2175_v51, %v2163_v41 }
 0x7ef   :  { %v2132_v14 = vunpack.i.h.bf16 %v2130_v12  ;;  %v2131_v55 = vunpack.i.l.bf16 %v2130_v12 }
 0x7f0   :  { %1302 = vxpose.xlu0.b32.start [1/2] (short) (narrow) %v1300_v13, 16  ;;  %952 = vxpose.xlu1.b32.end [2/2] (short) (narrow) %v950_v52, 16 }
 0x7f1   :  { %v2177_v56 = vpop.eup %2176  ;;  %v2092_v57 = vpack.c.bf16 %v2132_v14, %v2131_v55 }
 0x7f2   :  { %v1301_v58 = vmul.f32 %v2177_v56, %v2165_v8 }
 0x7f3   :  { %2093 = vmatprep.subr.bf16.mxu1 %v2092_v57 }
 0x7f4   :  { %1303 = vxpose.xlu0.b32.end [2/2] (short) (narrow) %v1301_v58, 16 }
 0x7f5   :  { %v2179_v59 = vpop.eup %2178 }
 0x7f6   :  { %v1129_v36 = vmul.f32 %v2179_v59, %v2169_v43  ;;  %v2181_v31 = vpop.eup %2180 }
 0x7f7   :  { %v1130_v60 = vmul.f32 %v2181_v31, %v2167_v10 }
 0x7f8   :  { %1131 = vxpose.xlu1.b32.start [1/2] (short) (narrow) %v1129_v36, 16 }
 0x7fc   :  { %1132 = vxpose.xlu1.b32.end [2/2] (short) (narrow) %v1130_v60, 16 }
 0x86c   :  { %v967_v61 = vpop.trf.xlu1 }
 0x86d   :  { %2024 = vmatprep.mubr.msk.f32.mxu1 %vm148_vm1, %v967_v61 }
 0x870   :  { %v1318_v62 = vpop.trf.xlu0  ;;  %v968_v63 = vpop.trf.xlu1 }
 0x871   :  { %2025 = vmatmul.mubr.msk.f32.vlgmr.msra.gmra.mrb[10].mxu1 %vm148_vm1, %v968_v63 }
 0x872   :  { %2095 = vmatpush3.bf16.msra.mxu1 %v2092_v57  ;;  %2038 = vmatprep.mubr.msk.f32.mxu1 %vm148_vm1, %v1318_v62 }
 0x873   :  { %2096 = vmatprep.subr.bf16.mxu1 %v2255_v6 }
 0x874   :  { %v1319_v0 = vpop.trf.xlu0 }
 0x875   :  { %2039 = vmatmul.mubr.msk.f32.vlgmr.msra.gmra.mrb[12].mxu1 %vm148_vm1, %v1319_v0 }
 0x876   :  { %2055 = vmatprep.mubr.msk.f32.mxu1 %vm2256_vm2, %v2257_v7 }
 0x878   :  { %v1147_v1 = vpop.trf.xlu1 }
 0x879   :  { %2031 = vmatprep.mubr.msk.f32.mxu0 %vm148_vm1, %v1147_v1 }
 0x87c   :  { %v1148_v2 = vpop.trf.xlu1 }
 0x87d   :  { %2032 = vmatmul.mubr.msk.f32.vlgmr.msra.gmra.mrb[8].mxu0 %vm148_vm1, %v1148_v2 }
 0x87e   :  { %2042 = vmatpush3.msra.mxu0 %v2450_v53 }
 0x87f   :  { %2046 = vmatprep.subr.mxu0 %v2457_v54 }
 0x944   :  { %v2026_v3 = vpop.f32.mrb[10].mxu1 }
 0x945   :  { %v1068_v4 = vmul.f32 1.442695, %v2026_v3  ;;  %v1055_v5 = vpop.f32.mrb[11].mxu1  ;;  %vm1065_vm2 = vcmp.gt.f32.partialorder %v2026_v3, 0.0 }
 0x946   :  { %v1066_v6 = vmul.f32 1.442695, %v1055_v5  ;;  %vm1064_vm4 = vcmp.gt.f32.partialorder %v1055_v5, 0.0 }
 0x947   :  { %2182 = vpow2.f32 %v1068_v4 }
 0x948   :  { %2184 = vpow2.f32 %v1066_v6  ;;  %v2040_v11 = vpop.f32.mrb[12].mxu1 }
 0x949   :  { %v1425_v16 = vmul.f32 1.442695, %v2040_v11  ;;  %v1412_v19 = vpop.f32.mrb[13].mxu1  ;;  %vm1422_vm11 = vcmp.gt.f32.partialorder %v2040_v11, 0.0 }
 0x94a   :  { %v1423_v7 = vmul.f32 1.442695, %v1412_v19  ;;  %vm1421_vm7 = vcmp.gt.f32.partialorder %v1412_v19, 0.0 }
 0x94b   :  { %2186 = vpow2.f32 %v1425_v16 }
 0x94c   :  { %2188 = vpow2.f32 %v1423_v7 }
 0x950   :  { %v2033_v20 = vpop.f32.mrb[8].mxu0 }
 0x951   :  { %v2183_v23 = vpop.eup %2182  ;;  %v1248_v25 = vmul.f32 1.442695, %v2033_v20  ;;  %v1235_v26 = vpop.f32.mrb[9].mxu0  ;;  %vm1245_vm13 = vcmp.gt.f32.partialorder %v2033_v20, 0.0 }
 0x952   :  { %v2185_v28 = vpop.eup %2184  ;;  %v1885_v53 = vadd.f32 -1.0, %v2183_v23  ;;  %v1246_v32 = vmul.f32 1.442695, %v1235_v26  ;;  %vm1244_vm12 = vcmp.gt.f32.partialorder %v1235_v26, 0.0 }
 0x953   :  { %v1884_v33 = vadd.f32 -1.0, %v2185_v28  ;;  %2190 = vpow2.f32 %v1248_v25 }
 0x954   :  { %v1073_v34 = vsel %vm1065_vm2, %v2026_v3, %v1885_v53  ;;  %2192 = vpow2.f32 %v1246_v32 }
 0x955   :  { %v2187_v35 = vpop.eup %2186  ;;  %1075 = vst [vmem:[#allocation5 + $0x8] sm:$0xff] %v1073_v34  ;;  %v1072_v37 = vsel %vm1064_vm4, %v1055_v5, %v1884_v33 }
 0x956   :  { %v2189_v38 = vpop.eup %2188  ;;  %1074 = vst [vmem:[#allocation5] sm:$0xff] %v1072_v37  ;;  %v1895_v39 = vadd.f32 -1.0, %v2187_v35 }
 0x957   :  { %v1894_v40 = vadd.f32 -1.0, %v2189_v38 }
 0x958   :  { %v1430_v42 = vsel %vm1422_vm11, %v2040_v11, %v1895_v39 }
 0x959   :  { %v1429_v41 = vsel %vm1421_vm7, %v1412_v19, %v1894_v40 }
 0x95a   :  { %2043 = vmatprep.mubr.msk.f32.mxu0 %vm49_vm0, %v1429_v41 }
 0x95b   :  { %2044 = vmatmul.mubr.msk.f32.vlgmr.msra.gmra.mrb[10].mxu0 %vm49_vm0, %v1430_v42 }
 0x95c   :  { %2047 = vmatpush3.msra.mxu0 %v2457_v54  ;;  %v1606_v54 = vld [vmem:[%s2575_s7] sm:$0x1]  ;;  %s2262_s7 = smov [#allocation5]  }
 0x95d   :  { %v2191_v8 = vpop.eup %2190  ;;  %s1843_s20 = sshll.u32 %s2262_s7, 4  ;;  %s1844_s20 = int_to_ptr.vmem [resolvable:$true] %s1843_s20 }
 0x95e   :  { %v2193_v9 = vpop.eup %2192  ;;  %v1891_v10 = vadd.f32 -1.0, %v2191_v8  ;;  %s2228_s21 = scalar_lea.vmem %s1844_s20, 512  ;;  %p2233_p9 = scmp.lt.s32.totalorder %s1844_s20, %s1844_s20 }
 0x95f   :  { %v1890_v43 = vadd.f32 -1.0, %v2193_v9  ;;  %p2229_p8 = scmp.ne.s32.totalorder %s1844_s20, %s2228_s21  ;;  %p2234_p10 = scmp.lt.s32.totalorder %s2228_s21, %s2228_s21 }
 0x960   :  { %v1253_v44 = vsel %vm1245_vm13, %v2033_v20, %v1891_v10 }
 0x961   :  { %v1252_v15 = vsel %vm1244_vm12, %v1235_v26, %v1890_v43  ;;  %p2235_p11 = por %p2234_p10, %p2233_p9 }
 0x962   :  { %2048 = vmatprep.mubr.msk.f32.mxu0 %vm49_vm0, %v1252_v15 }
 0x963   :  { %2049 = vmatmul.mubr.msk.f32.vlgmr.msra.gmra.mrb[10].mxu0 %vm49_vm0, %v1253_v44  ;;  %p2236_p12 = pnand %p2235_p11, %p2229_p8 }
 0xa36   :  { %v2050_v29 = vpop.f32.mrb[10].mxu0 }
 0xa37   :  { %v1584_v45 = vpop.f32.mrb[11].mxu0  ;;  %v1601_v46 = vmul.f32 %v2050_v29, %v2468_v24 }
 0xa38   :  { %v2097_v30 = vpack.c.bf16 %v2050_v29, %v1584_v45  ;;  %v1600_v47 = vmul.f32 %v2468_v24, %v1584_v45 }
 0xa39   :  { %1604 = vadd.xlane.f32.xlu1 %v1601_v46 }
 0xa3a   :  { %2098 = vmatpush3.bf16.xpose.msra.mxu1 %v2097_v30  ;;  %2100 = vmatprep.subr.bf16.mxu0 %v2097_v30 }
 0xa3b   :  { %1602 = vadd.xlane.f32.xlu0 %v1600_v47  ;;  %2102 = vmatpush3.bf16.msra.mxu0 %v2097_v30 }
 0xa41   :  { %2056 = vmatmul.mubr.f32.vlgmr.msra.gmra.mrb[14].mxu1 %v1606_v54 }
 0xac6   :  { %v1605_v50 = vpop.xlane.xlu1 %1604 }
 0xac8   :  { %v1603_v51 = vpop.xlane.xlu0 %1602 }
 0xb14   :  { %v1673_v48 = vpop.f32.mrb[14].mxu1 }
 0xb15   :  { %v1680_v18 = vrot.slane %v1673_v48, %v2389_v27  ;;  %v2057_v21 = vpop.f32.mrb[15].mxu1 }
 0xb17   :  { %v1681_v52 = vadd.f32 %v1680_v18, %v1603_v51  ;;  %v1682_v12 = vadd.f32 %v1680_v18, %v1605_v50 }
 0xb19   :  { %vm1684_vm0 = vcmp.gt.f32.partialorder %v1682_v12, 0.0  ;;  %v1686_v24 = vmul.f32 0.2, %v1682_v12  ;;  %vm1683_vm14 = vcmp.gt.f32.partialorder %v1681_v52, 0.0  ;;  %v1685_v13 = vmul.f32 0.2, %v1681_v52 }
 0xb1b   :  { %v1688_v14 = vsel %vm1684_vm0, %v1682_v12, %v1686_v24  ;;  %v1687_v55 = vsel %vm1683_vm14, %v1681_v52, %v1685_v13 }
 0xb1c   :  { %v1690_v56 = vsel %vm1080_vm9, %v1688_v14, -9e+15  ;;  %v1689_v57 = vsel %vm1079_vm10, %v1687_v55, -9e+15 }
 0xb1d   :  { %v1694_v58 = vsel %vm148_vm1, %v1690_v56, -inf  ;;  %v1691_v27 = vsel %vm148_vm1, %v1689_v57, -inf }
 0xb1e   :  { %1695 = vmax.xlane.f32.xlu1 %v1694_v58  ;;  %1692 = vmax.xlane.f32.xlu0 %v1691_v27 }
 0xbab   :  { %v1696_v59 = vpop.xlane.xlu1 %1695  ;;  %v1693_v36 = vpop.xlane.xlu0 %1692 }
 0xbac   :  { %v1698_v31 = vsub.f32 %v1690_v56, %v1696_v59  ;;  %v1697_v60 = vsub.f32 %v1689_v57, %v1693_v36 }
 0xbae   :  { %v1701_v61 = vmul.f32 1.442695, %v1698_v31  ;;  %v1699_v62 = vmul.f32 1.442695, %v1697_v60 }
 0xbb0   :  { %2194 = vpow2.f32 %v1701_v61 }
 0xbb1   :  { %2196 = vpow2.f32 %v1699_v62 }
 0xbba   :  { %v2195_v63 = vpop.eup %2194 }
 0xbbb   :  { %v2197_v22 = vpop.eup %2196  ;;  %v1706_v0 = vsel %vm148_vm1, %v2195_v63, 0.0 }
 0xbbc   :  { %1707 = vadd.xlane.f32.xlu1 %v1706_v0  ;;  %v1703_v49 = vsel %vm148_vm1, %v2197_v22, 0.0 }
 0xbbd   :  { %1704 = vadd.xlane.f32.xlu0 %v1703_v49 }
 0xc49   :  { %v1708_v1 = vpop.xlane.xlu1 %1707 }
 0xc4a   :  { %v1705_v2 = vpop.xlane.xlu0 %1704 }
 0xc4b   :  { %2198 = vrcp.f32 %v1705_v2 }
 0xc4c   :  { %2200 = vrcp.f32 %v1708_v1 }
 0xc55   :  { %v2199_v3 = vpop.eup %2198 }
 0xc56   :  { %v1711_v4 = vmul.f32 %v2199_v3, %v2197_v22  ;;  %v2201_v5 = vpop.eup %2200 }
 0xc57   :  { %v1712_v6 = vmul.f32 %v2201_v5, %v2195_v63 }
 0xc58   :  { %1713 = vxpose.xlu0.b32.start [1/2] (short) (narrow) %v1711_v4, 16 }
 0xc5c   :  { %1714 = vxpose.xlu0.b32.end [2/2] (short) (narrow) %v1712_v6, 16 }
 0xc85   :  { %2133 = vset.pattern.permute.xlu0 %v2258_v17 }
 0xcd8   :  { %v1729_v11 = vpop.trf.xlu0 }
 0xcd9   :  { %2062 = vmatprep.mubr.msk.f32.mxu0 %vm148_vm1, %v1729_v11 }
 0xcdc   :  { %v1730_v16 = vpop.trf.xlu0 }
 0xcdd   :  { %2063 = vmatmul.mubr.msk.f32.vlgmr.msra.gmra.mrb[12].mxu0 %vm148_vm1, %v1730_v16 }
 0xdb0   :  { %v2064_v19 = vpop.f32.mrb[12].mxu0 }
 0xdb1   :  { %v1830_v7 = vmul.f32 1.442695, %v2064_v19  ;;  %v1817_v20 = vpop.f32.mrb[13].mxu0  ;;  %vm1827_vm15 = vcmp.gt.f32.partialorder %v2064_v19, 0.0 }
 0xdb2   :  { %v1828_v23 = vmul.f32 1.442695, %v1817_v20  ;;  %vm1826_vm3 = vcmp.gt.f32.partialorder %v1817_v20, 0.0 }
 0xdb3   :  { %2202 = vpow2.f32 %v1830_v7 }
 0xdb4   :  { %2204 = vpow2.f32 %v1828_v23 }
 0xdbd   :  { %v2203_v25 = vpop.eup %2202 }
 0xdbe   :  { %v2205_v26 = vpop.eup %2204  ;;  %v1904_v28 = vadd.f32 -1.0, %v2203_v25 }
 0xdbf   :  { %v1903_v53 = vadd.f32 -1.0, %v2205_v26 }
 0xdc0   :  { %v1835_v17 = vsel %vm1827_vm15, %v2064_v19, %v1904_v28 }
 0xdc1   :  { %1837 = vst [vmem:[#allocation5 + $0x18] sm:$0xff] %v1835_v17  ;;  %v1834_v32 = vsel %vm1826_vm3, %v1817_v20, %v1903_v53 }
 0xdc2   :  { %1836 = vst [vmem:[#allocation5 + $0x10] sm:$0xff] %v1834_v32 }
 0xdc3   :  { %2239 = shalt.err (!%p2236_p12)
}
 0xdc4   :  { %s2240_s23 = scalar_lea.hbm %s2576_s8, 512 }
 0xdc5   :  { %p2241_p13 = scmp.ne.s32.totalorder %s2576_s8, %s2240_s23  ;;  %p2244_p0 = scmp.lt.u32.totalorder %s2240_s23, %s2576_s8 }
 0xdc7   :  { %p2246_p1 = pnand %p2244_p0, %p2241_p13 }
 0xdc9   :  { %2249 = shalt.err (!%p2246_p1)
}
 0xdca   :  { %s2263_s4 = smov 128   ;;  %s2264_s26 = smov 8  }
 0xdcb   :  { %1849 = dma.vmem_to_hbm [thread:$0]  %s1844_s20, 512, %s2576_s8, [#allocation4], %s2263_s4, %s2263_s4, %s2264_s26  }
 0xdcc   :  { %2252 = dma.done.wait [#allocation4], 512  }
 0xdcd   :  { %2253 = vsyncadd [#allocation4], 4294966784 }
 0xdce   :  { %1853 = vsyncpa [#allocation3], 1 }
 0xdcf   :  { %1854 = vsyncpa [#allocation4], 1 }

</bundles_post_ra>
